<compile_context>
chip_gen: v5e
topology: v5e:2x2
jax: 0.10.0
libtpu: 0.0.40
codegen_flags: <defaults>
</compile_context>

<pallas_src>
import functools

import jax
import jax.numpy as jnp
from jax.experimental import pallas as pl
from jax.experimental.pallas import tpu as pltpu

HIDDEN = 8                        # hidden channels of the synthetic conv model
CONV_PAD = 8                      # conv1 input channels zero-padded to this
VMEM_LIMIT = 32 * 1024 * 1024     # scoped-VMEM budget (safe on v5e..v7x)


# ----------------------------------------------------------------------------
# Kernel 1 (fused, gridless): sens_reduce combine -> 2-layer 3x3 CNN ->
#                             sens_expand combine.  Everything stays in VMEM.
# ----------------------------------------------------------------------------
def fused_reduce_conv_expand_kernel(xr_ref, xi_ref, sr_ref, si_ref, tmask_ref,
                                    w1_ref, b1_ref, w2_ref, b2_ref,
                                    er_ref, ei_ref, *, shifts):
    xr = xr_ref[...]                       # (C, B*H*W) f32, coil-major layout
    xi = xi_ref[...]
    sr = sr_ref[...]
    si = si_ref[...]
    tmask = tmask_ref[...]                 # (9, B*H*W) f32 {0,1} border masks

    # sens_reduce combine: complex_mul(x, conj(sens)) summed over coils.
    red_r = jnp.sum(xr * sr + xi * si, axis=0, keepdims=True)   # (1, lanes)
    red_i = jnp.sum(xi * sr - xr * si, axis=0, keepdims=True)

    lanes = xr.shape[1]
    # Zero-pad the 2-channel image to CONV_PAD channels so every im2col tap is
    # a full (8, lanes) sublane group -> aligned concat, no sublane repacking.
    img = jnp.concatenate(
        [red_r, red_i, jnp.zeros((CONV_PAD - 2, lanes), jnp.float32)], axis=0)

    def im2col(planes):
        """(8, lanes) f32 -> (72, lanes) bf16 tap-major patch matrix."""
        taps = []
        for k, shift in enumerate(shifts):
            rolled = pltpu.roll(planes, shift, axis=1) if shift else planes
            taps.append(rolled * tmask[k:k + 1, :])     # precomputed 0/1 mask
        return jnp.concatenate(taps, axis=0).astype(jnp.bfloat16)

    # conv1 (3x3, pad=1) + ReLU — im2col matmul on the MXU (bf16 in, f32 acc).
    p1 = im2col(img)                                            # (72, lanes)
    h = jnp.dot(w1_ref[...], p1,
                preferred_element_type=jnp.float32) + b1_ref[...]
    h = jnp.maximum(h, 0.0)                                     # (8, lanes)

    # conv2 (3x3, pad=1)
    p2 = im2col(h)                                              # (72, lanes)
    y = jnp.dot(w2_ref[...], p2,
                preferred_element_type=jnp.float32) + b2_ref[...]
    yr = y[0:1, :]                                              # (1, lanes)
    yi = y[1:2, :]

    # sens_expand combine: complex_mul(y, sens) broadcast over coils.
    er_ref[...] = yr * sr - yi * si
    ei_ref[...] = yr * si + yi * sr


def _reduce_conv_expand(xr, xi, sr, si, tap_masks, w1m, b1m, w2m, b2m, shifts):
    C, lanes = xr.shape
    kernel = functools.partial(fused_reduce_conv_expand_kernel, shifts=shifts)
    return pl.pallas_call(
        kernel,
        out_shape=(jax.ShapeDtypeStruct((C, lanes), jnp.float32),
                   jax.ShapeDtypeStruct((C, lanes), jnp.float32)),
        compiler_params=pltpu.CompilerParams(vmem_limit_bytes=VMEM_LIMIT),
    )(xr, xi, sr, si, tap_masks, w1m, b1m, w2m, b2m)


# ----------------------------------------------------------------------------
# Kernel 2 (gridless): soft data consistency in the interleaved layout
#   out = pred - (pred - ref) * where(mask != 0, dc_w, 0) - kpred
# ----------------------------------------------------------------------------
def dc_kernel(pred_ref, ref_ref, kpred_ref, dcf_ref, out_ref):
    p = pred_ref[...]                      # (B, C, H*W*2) f32, interleaved r/i
    dcf = dcf_ref[...]                     # (1, 1, H*W*2)
    out_ref[...] = p - (p - ref_ref[...]) * dcf - kpred_ref[...]


def _dc_combine(pred_flat, ref_flat, kpred_flat, dcf):
    return pl.pallas_call(
        dc_kernel,
        out_shape=jax.ShapeDtypeStruct(pred_flat.shape, jnp.float32),
        compiler_params=pltpu.CompilerParams(vmem_limit_bytes=VMEM_LIMIT),
    )(pred_flat, ref_flat, kpred_flat, dcf)


# ----------------------------------------------------------------------------
# Full CascadeNetBlock forward
# ----------------------------------------------------------------------------
def cascadenet_block_forward(pred, ref_kspace, sens_maps, mask, params):
    """
    pred, ref_kspace, sens_maps : [B, C, H, W, 2] float32
    mask                        : [1, 1, H, W, 1] float32
    Returns                     : [B, C, H, W, 2] float32
    fft_centered=False, fft_normalization="backward", spatial_dims=(-2,-1),
    coil_dim=1, no_dc=False.
    """
    w1, b1, w2, b2, dc_weight = params
    B, C, H, W = pred.shape[:4]
    HW = H * W
    lanes = B * HW

    # --- static im2col metadata (precomputed, passed to the kernel) ---------
    shifts = tuple((-(dh * W + dw)) % lanes
                   for dh in (-1, 0, 1) for dw in (-1, 0, 1))
    lane = jnp.arange(lanes, dtype=jnp.int32)
    col = lane % W
    row = (lane // W) % H           # row within each image (batch on lanes)
    tap_masks = jnp.stack(
        [((col + dw >= 0) & (col + dw < W) &
          (row + dh >= 0) & (row + dh < H)).astype(jnp.float32)
         for dh in (-1, 0, 1) for dw in (-1, 0, 1)], axis=0)      # (9, lanes)

    # --- conv weights: tap-major, channel-padded, bf16 ----------------------
    Ch, Cin = w1.shape[0], w1.shape[1]
    Cout = w2.shape[0]
    w1p = jnp.zeros((Ch, 3, 3, CONV_PAD), jnp.float32)
    w1p = w1p.at[..., :Cin].set(w1.transpose(0, 2, 3, 1))
    w1m = w1p.reshape(Ch, 9 * CONV_PAD).astype(jnp.bfloat16)      # (8, 72)
    w2m = (w2.transpose(0, 2, 3, 1).reshape(Cout, 9 * Ch)
           .astype(jnp.bfloat16))                                 # (2, 72)
    b1m = b1.reshape(Ch, 1)
    b2m = b2.reshape(Cout, 1)

    # --- ifft2(pred) in coil-major (C, B*H*W) lane-dense layout --------------
    # TODO(synk): FFT/IFFT have no Pallas TPU equivalent; jnp.fft stays in XLA.
    pred_c = jax.lax.complex(pred[..., 0], pred[..., 1])          # (B,C,H,W)
    img_c = jnp.fft.ifft2(pred_c, axes=(-2, -1), norm="backward")
    img_cm = jnp.transpose(img_c, (1, 0, 2, 3)).reshape(C, lanes)
    xr = jnp.real(img_cm)
    xi = jnp.imag(img_cm)
    sens_cm = jnp.transpose(sens_maps, (1, 0, 2, 3, 4)).reshape(C, lanes, 2)
    sr = sens_cm[..., 0]
    si = sens_cm[..., 1]

    # Fused Pallas kernel: reduce-combine -> CNN -> expand-combine (all VMEM).
    er, ei = _reduce_conv_expand(xr, xi, sr, si, tap_masks,
                                 w1m, b1m, w2m, b2m, shifts)

    # fft2 of the expanded multicoil image, re-interleaved for the DC kernel.
    k_c = jnp.fft.fft2(jax.lax.complex(er, ei).reshape(C, B, H, W),
                       axes=(-2, -1), norm="backward")
    k_c = jnp.transpose(k_c, (1, 0, 2, 3))                        # (B,C,H,W)
    kpred_flat = jnp.stack([jnp.real(k_c), jnp.imag(k_c)],
                           axis=-1).reshape(B, C, HW * 2)

    # Soft data consistency.  dc_weight folded into a where(mask != 0, ...)
    # factor so non-binary masks match torch.where; pred/ref/out reshapes are
    # free (no deinterleave/stack passes around the DC kernel).
    dcf = jnp.where(mask[0, 0, :, :, 0] != 0, dc_weight[0], 0.0)  # (H, W)
    dcf = jnp.broadcast_to(dcf[..., None], (H, W, 2)).reshape(1, 1, HW * 2)
    out = _dc_combine(pred.reshape(B, C, HW * 2),
                      ref_kspace.reshape(B, C, HW * 2),
                      kpred_flat, dcf)
    return out.reshape(B, C, H, W, 2)


def init_params(key):
    k1, k2, k3, k4 = jax.random.split(key, 4)
    w1 = 0.1 * jax.random.normal(k1, (HIDDEN, 2, 3, 3), jnp.float32)
    b1 = 0.01 * jax.random.normal(k2, (HIDDEN, 1, 1), jnp.float32)
    w2 = 0.1 * jax.random.normal(k3, (2, HIDDEN, 3, 3), jnp.float32)
    b2 = 0.01 * jax.random.normal(k4, (2, 1, 1), jnp.float32)
    dc_weight = jnp.ones((1,), jnp.float32)   # torch.nn.Parameter(torch.ones(1))
    return (w1, b1, w2, b2, dc_weight)


# ----------------------------------------------------------------------------
# Pure-JAX reference (correctness check)
# ----------------------------------------------------------------------------
def _reference_forward(pred, ref_kspace, sens_maps, mask, params):
    w1, b1, w2, b2, dc_weight = params
    pred_c = jax.lax.complex(pred[..., 0], pred[..., 1])
    ref_c = jax.lax.complex(ref_kspace[..., 0], ref_kspace[..., 1])
    sens_c = jax.lax.complex(sens_maps[..., 0], sens_maps[..., 1])

    img = jnp.fft.ifft2(pred_c, axes=(-2, -1), norm="backward")
    red = jnp.sum(img * jnp.conj(sens_c), axis=1)               # [B, H, W]
    x = jnp.stack([jnp.real(red), jnp.imag(red)], axis=1)       # [B, 2, H, W]
    dn = ("NCHW", "OIHW", "NCHW")
    h = jax.lax.conv_general_dilated(
        x, w1, (1, 1), "SAME", dimension_numbers=dn,
        precision=jax.lax.Precision.HIGHEST) + b1[None]
    h = jnp.maximum(h, 0.0)
    y = jax.lax.conv_general_dilated(
        h, w2, (1, 1), "SAME", dimension_numbers=dn,
        precision=jax.lax.Precision.HIGHEST) + b2[None]
    y_c = jax.lax.complex(y[:, 0], y[:, 1])                     # [B, H, W]
    kpred = jnp.fft.fft2(y_c[:, None] * sens_c, axes=(-2, -1), norm="backward")
    soft_dc = jnp.where(mask[..., 0] != 0, pred_c - ref_c, 0.0) * dc_weight[0]
    out_c = pred_c - soft_dc - kpred
    return jnp.stack([jnp.real(out_c), jnp.imag(out_c)],
                     axis=-1).astype(jnp.float32)


if __name__ == "__main__":
    key = jax.random.PRNGKey(0)
    kp, ka, kb, kc = jax.random.split(key, 4)

    B, C, H, W = 2, 4, 16, 16
    pred = jax.random.normal(ka, (B, C, H, W, 2), jnp.float32)
    ref_kspace = jax.random.normal(kb, (B, C, H, W, 2), jnp.float32)
    sens_maps = jax.random.normal(kc, (B, C, H, W, 2), jnp.float32)
    # 0/1 subsampling mask over k-space columns
    mask_1d = (jnp.arange(W) % 2 == 0).astype(jnp.float32)
    mask = jnp.broadcast_to(mask_1d[None, None, None, :, None], (1, 1, H, W, 1))

    params = init_params(kp)

    fwd = jax.jit(cascadenet_block_forward)
    out = jax.block_until_ready(fwd(pred, ref_kspace, sens_maps, mask, params))

    assert out.shape == (B, C, H, W, 2), out.shape
    assert out.dtype == jnp.float32

    ref = _reference_forward(pred, ref_kspace, sens_maps, mask, params)
    err = float(jnp.max(jnp.abs(out - ref)))
    scale = float(jnp.max(jnp.abs(ref))) + 1e-6
    # Tolerance sized for the bf16 MXU im2col path (~0.5-1% relative error on
    # the conv/k-space term); a tap-ordering or weight-reshape bug produces
    # O(1) relative error and is still caught.
    assert err / scale < 2e-2, (err, scale)

    print("KERNEL_OK")
</pallas_src>

<mosaic_0001>
module attributes {stable_mosaic.version = 11 : i64} {
  func.func @fused_reduce_conv_expand_kernel(%arg0: memref<4x512xf32, #tpu.memory_space<vmem>>, %arg1: memref<4x512xf32, #tpu.memory_space<vmem>>, %arg2: memref<4x512xf32, #tpu.memory_space<vmem>>, %arg3: memref<4x512xf32, #tpu.memory_space<vmem>>, %arg4: memref<9x512xf32, #tpu.memory_space<vmem>>, %arg5: memref<8x72xbf16, #tpu.memory_space<vmem>>, %arg6: memref<8x1xf32, #tpu.memory_space<vmem>>, %arg7: memref<2x72xbf16, #tpu.memory_space<vmem>>, %arg8: memref<2x1xf32, #tpu.memory_space<vmem>>, %arg9: memref<4x512xf32, #tpu.memory_space<vmem>>, %arg10: memref<4x512xf32, #tpu.memory_space<vmem>>) attributes {dimension_semantics = [], scalar_prefetch = 0 : i64, scratch_operands = 0 : i64, tpu.core_type = #tpu.core_type<tc>} {
    %c0 = arith.constant 0 : index
    %c0_0 = arith.constant 0 : index
    %0 = vector.load %arg0[%c0, %c0_0] : memref<4x512xf32, #tpu.memory_space<vmem>>, vector<4x512xf32>
    %c0_1 = arith.constant 0 : index
    %c0_2 = arith.constant 0 : index
    %1 = vector.load %arg1[%c0_1, %c0_2] : memref<4x512xf32, #tpu.memory_space<vmem>>, vector<4x512xf32>
    %c0_3 = arith.constant 0 : index
    %c0_4 = arith.constant 0 : index
    %2 = vector.load %arg2[%c0_3, %c0_4] : memref<4x512xf32, #tpu.memory_space<vmem>>, vector<4x512xf32>
    %c0_5 = arith.constant 0 : index
    %c0_6 = arith.constant 0 : index
    %3 = vector.load %arg3[%c0_5, %c0_6] : memref<4x512xf32, #tpu.memory_space<vmem>>, vector<4x512xf32>
    %c0_7 = arith.constant 0 : index
    %c0_8 = arith.constant 0 : index
    %4 = vector.load %arg4[%c0_7, %c0_8] : memref<9x512xf32, #tpu.memory_space<vmem>>, vector<9x512xf32>
    %5 = arith.mulf %0, %2 : vector<4x512xf32>
    %6 = arith.mulf %1, %3 : vector<4x512xf32>
    %7 = arith.addf %5, %6 : vector<4x512xf32>
    %cst = arith.constant dense<0.000000e+00> : vector<512xf32>
    %8 = vector.multi_reduction <add>, %7, %cst [0] : vector<4x512xf32> to vector<512xf32>
    %9 = vector.shape_cast %8 : vector<512xf32> to vector<1x512xf32>
    %10 = arith.mulf %1, %2 : vector<4x512xf32>
    %11 = arith.mulf %0, %3 : vector<4x512xf32>
    %12 = arith.subf %10, %11 : vector<4x512xf32>
    %cst_9 = arith.constant dense<0.000000e+00> : vector<512xf32>
    %13 = vector.multi_reduction <add>, %12, %cst_9 [0] : vector<4x512xf32> to vector<512xf32>
    %14 = vector.shape_cast %13 : vector<512xf32> to vector<1x512xf32>
    %cst_10 = arith.constant 0.000000e+00 : f32
    %15 = vector.broadcast %cst_10 : f32 to vector<6x512xf32>
    %16 = tpu.concatenate %9, %14, %15 in 0 : vector<1x512xf32>, vector<1x512xf32>, vector<6x512xf32> -> vector<8x512xf32>
    %c17_i32 = arith.constant 17 : i32
    %17 = tpu.dynamic_rotate %16 by %c17_i32 dim 1 : vector<8x512xf32>, i32 -> vector<8x512xf32>
    %18 = vector.extract_strided_slice %4 {offsets = [0, 0], sizes = [1, 512], strides = [1, 1]} : vector<9x512xf32> to vector<1x512xf32>
    %19 = vector.broadcast %18 : vector<1x512xf32> to vector<8x512xf32>
    %20 = arith.mulf %17, %19 : vector<8x512xf32>
    %c16_i32 = arith.constant 16 : i32
    %21 = tpu.dynamic_rotate %16 by %c16_i32 dim 1 : vector<8x512xf32>, i32 -> vector<8x512xf32>
    %22 = vector.extract_strided_slice %4 {offsets = [1, 0], sizes = [1, 512], strides = [1, 1]} : vector<9x512xf32> to vector<1x512xf32>
    %23 = vector.broadcast %22 : vector<1x512xf32> to vector<8x512xf32>
    %24 = arith.mulf %21, %23 : vector<8x512xf32>
    %c15_i32 = arith.constant 15 : i32
    %25 = tpu.dynamic_rotate %16 by %c15_i32 dim 1 : vector<8x512xf32>, i32 -> vector<8x512xf32>
    %26 = vector.extract_strided_slice %4 {offsets = [2, 0], sizes = [1, 512], strides = [1, 1]} : vector<9x512xf32> to vector<1x512xf32>
    %27 = vector.broadcast %26 : vector<1x512xf32> to vector<8x512xf32>
    %28 = arith.mulf %25, %27 : vector<8x512xf32>
    %c1_i32 = arith.constant 1 : i32
    %29 = tpu.dynamic_rotate %16 by %c1_i32 dim 1 : vector<8x512xf32>, i32 -> vector<8x512xf32>
    %30 = vector.extract_strided_slice %4 {offsets = [3, 0], sizes = [1, 512], strides = [1, 1]} : vector<9x512xf32> to vector<1x512xf32>
    %31 = vector.broadcast %30 : vector<1x512xf32> to vector<8x512xf32>
    %32 = arith.mulf %29, %31 : vector<8x512xf32>
    %33 = vector.extract_strided_slice %4 {offsets = [4, 0], sizes = [1, 512], strides = [1, 1]} : vector<9x512xf32> to vector<1x512xf32>
    %34 = vector.broadcast %33 : vector<1x512xf32> to vector<8x512xf32>
    %35 = arith.mulf %16, %34 : vector<8x512xf32>
    %c511_i32 = arith.constant 511 : i32
    %36 = tpu.dynamic_rotate %16 by %c511_i32 dim 1 : vector<8x512xf32>, i32 -> vector<8x512xf32>
    %37 = vector.extract_strided_slice %4 {offsets = [5, 0], sizes = [1, 512], strides = [1, 1]} : vector<9x512xf32> to vector<1x512xf32>
    %38 = vector.broadcast %37 : vector<1x512xf32> to vector<8x512xf32>
    %39 = arith.mulf %36, %38 : vector<8x512xf32>
    %c497_i32 = arith.constant 497 : i32
    %40 = tpu.dynamic_rotate %16 by %c497_i32 dim 1 : vector<8x512xf32>, i32 -> vector<8x512xf32>
    %41 = vector.extract_strided_slice %4 {offsets = [6, 0], sizes = [1, 512], strides = [1, 1]} : vector<9x512xf32> to vector<1x512xf32>
    %42 = vector.broadcast %41 : vector<1x512xf32> to vector<8x512xf32>
    %43 = arith.mulf %40, %42 : vector<8x512xf32>
    %c496_i32 = arith.constant 496 : i32
    %44 = tpu.dynamic_rotate %16 by %c496_i32 dim 1 : vector<8x512xf32>, i32 -> vector<8x512xf32>
    %45 = vector.extract_strided_slice %4 {offsets = [7, 0], sizes = [1, 512], strides = [1, 1]} : vector<9x512xf32> to vector<1x512xf32>
    %46 = vector.broadcast %45 : vector<1x512xf32> to vector<8x512xf32>
    %47 = arith.mulf %44, %46 : vector<8x512xf32>
    %c495_i32 = arith.constant 495 : i32
    %48 = tpu.dynamic_rotate %16 by %c495_i32 dim 1 : vector<8x512xf32>, i32 -> vector<8x512xf32>
    %49 = vector.extract_strided_slice %4 {offsets = [8, 0], sizes = [1, 512], strides = [1, 1]} : vector<9x512xf32> to vector<1x512xf32>
    %50 = vector.broadcast %49 : vector<1x512xf32> to vector<8x512xf32>
    %51 = arith.mulf %48, %50 : vector<8x512xf32>
    %52 = tpu.concatenate %20, %24, %28, %32, %35, %39, %43, %47, %51 in 0 : vector<8x512xf32>, vector<8x512xf32>, vector<8x512xf32>, vector<8x512xf32>, vector<8x512xf32>, vector<8x512xf32>, vector<8x512xf32>, vector<8x512xf32>, vector<8x512xf32> -> vector<72x512xf32>
    %53 = arith.truncf %52 : vector<72x512xf32> to vector<72x512xbf16>
    %c0_11 = arith.constant 0 : index
    %c0_12 = arith.constant 0 : index
    %54 = vector.load %arg5[%c0_11, %c0_12] : memref<8x72xbf16, #tpu.memory_space<vmem>>, vector<8x72xbf16>
    %cst_13 = arith.constant dense<0.000000e+00> : vector<8x512xf32>
    %55 = tpu.matmul %54, %53, %cst_13 {dimension_numbers = #tpu.dot_dimension_numbers<[1], [0], [0], [1], [0, 0, 1, 1], [], []>} : vector<8x72xbf16>, vector<72x512xbf16>, vector<8x512xf32> -> vector<8x512xf32>
    %c0_14 = arith.constant 0 : index
    %c0_15 = arith.constant 0 : index
    %56 = vector.load %arg6[%c0_14, %c0_15] : memref<8x1xf32, #tpu.memory_space<vmem>>, vector<8x1xf32>
    %57 = vector.broadcast %56 : vector<8x1xf32> to vector<8x512xf32>
    %58 = arith.addf %55, %57 : vector<8x512xf32>
    %cst_16 = arith.constant 0.000000e+00 : f32
    %59 = vector.broadcast %cst_16 : f32 to vector<8x512xf32>
    %60 = arith.maximumf %58, %59 : vector<8x512xf32>
    %c17_i32_17 = arith.constant 17 : i32
    %61 = tpu.dynamic_rotate %60 by %c17_i32_17 dim 1 : vector<8x512xf32>, i32 -> vector<8x512xf32>
    %62 = vector.extract_strided_slice %4 {offsets = [0, 0], sizes = [1, 512], strides = [1, 1]} : vector<9x512xf32> to vector<1x512xf32>
    %63 = vector.broadcast %62 : vector<1x512xf32> to vector<8x512xf32>
    %64 = arith.mulf %61, %63 : vector<8x512xf32>
    %c16_i32_18 = arith.constant 16 : i32
    %65 = tpu.dynamic_rotate %60 by %c16_i32_18 dim 1 : vector<8x512xf32>, i32 -> vector<8x512xf32>
    %66 = vector.extract_strided_slice %4 {offsets = [1, 0], sizes = [1, 512], strides = [1, 1]} : vector<9x512xf32> to vector<1x512xf32>
    %67 = vector.broadcast %66 : vector<1x512xf32> to vector<8x512xf32>
    %68 = arith.mulf %65, %67 : vector<8x512xf32>
    %c15_i32_19 = arith.constant 15 : i32
    %69 = tpu.dynamic_rotate %60 by %c15_i32_19 dim 1 : vector<8x512xf32>, i32 -> vector<8x512xf32>
    %70 = vector.extract_strided_slice %4 {offsets = [2, 0], sizes = [1, 512], strides = [1, 1]} : vector<9x512xf32> to vector<1x512xf32>
    %71 = vector.broadcast %70 : vector<1x512xf32> to vector<8x512xf32>
    %72 = arith.mulf %69, %71 : vector<8x512xf32>
    %c1_i32_20 = arith.constant 1 : i32
    %73 = tpu.dynamic_rotate %60 by %c1_i32_20 dim 1 : vector<8x512xf32>, i32 -> vector<8x512xf32>
    %74 = vector.extract_strided_slice %4 {offsets = [3, 0], sizes = [1, 512], strides = [1, 1]} : vector<9x512xf32> to vector<1x512xf32>
    %75 = vector.broadcast %74 : vector<1x512xf32> to vector<8x512xf32>
    %76 = arith.mulf %73, %75 : vector<8x512xf32>
    %77 = vector.extract_strided_slice %4 {offsets = [4, 0], sizes = [1, 512], strides = [1, 1]} : vector<9x512xf32> to vector<1x512xf32>
    %78 = vector.broadcast %77 : vector<1x512xf32> to vector<8x512xf32>
    %79 = arith.mulf %60, %78 : vector<8x512xf32>
    %c511_i32_21 = arith.constant 511 : i32
    %80 = tpu.dynamic_rotate %60 by %c511_i32_21 dim 1 : vector<8x512xf32>, i32 -> vector<8x512xf32>
    %81 = vector.extract_strided_slice %4 {offsets = [5, 0], sizes = [1, 512], strides = [1, 1]} : vector<9x512xf32> to vector<1x512xf32>
    %82 = vector.broadcast %81 : vector<1x512xf32> to vector<8x512xf32>
    %83 = arith.mulf %80, %82 : vector<8x512xf32>
    %c497_i32_22 = arith.constant 497 : i32
    %84 = tpu.dynamic_rotate %60 by %c497_i32_22 dim 1 : vector<8x512xf32>, i32 -> vector<8x512xf32>
    %85 = vector.extract_strided_slice %4 {offsets = [6, 0], sizes = [1, 512], strides = [1, 1]} : vector<9x512xf32> to vector<1x512xf32>
    %86 = vector.broadcast %85 : vector<1x512xf32> to vector<8x512xf32>
    %87 = arith.mulf %84, %86 : vector<8x512xf32>
    %c496_i32_23 = arith.constant 496 : i32
    %88 = tpu.dynamic_rotate %60 by %c496_i32_23 dim 1 : vector<8x512xf32>, i32 -> vector<8x512xf32>
    %89 = vector.extract_strided_slice %4 {offsets = [7, 0], sizes = [1, 512], strides = [1, 1]} : vector<9x512xf32> to vector<1x512xf32>
    %90 = vector.broadcast %89 : vector<1x512xf32> to vector<8x512xf32>
    %91 = arith.mulf %88, %90 : vector<8x512xf32>
    %c495_i32_24 = arith.constant 495 : i32
    %92 = tpu.dynamic_rotate %60 by %c495_i32_24 dim 1 : vector<8x512xf32>, i32 -> vector<8x512xf32>
    %93 = vector.extract_strided_slice %4 {offsets = [8, 0], sizes = [1, 512], strides = [1, 1]} : vector<9x512xf32> to vector<1x512xf32>
    %94 = vector.broadcast %93 : vector<1x512xf32> to vector<8x512xf32>
    %95 = arith.mulf %92, %94 : vector<8x512xf32>
    %96 = tpu.concatenate %64, %68, %72, %76, %79, %83, %87, %91, %95 in 0 : vector<8x512xf32>, vector<8x512xf32>, vector<8x512xf32>, vector<8x512xf32>, vector<8x512xf32>, vector<8x512xf32>, vector<8x512xf32>, vector<8x512xf32>, vector<8x512xf32> -> vector<72x512xf32>
    %97 = arith.truncf %96 : vector<72x512xf32> to vector<72x512xbf16>
    %c0_25 = arith.constant 0 : index
    %c0_26 = arith.constant 0 : index
    %98 = vector.load %arg7[%c0_25, %c0_26] : memref<2x72xbf16, #tpu.memory_space<vmem>>, vector<2x72xbf16>
    %cst_27 = arith.constant dense<0.000000e+00> : vector<2x512xf32>
    %99 = tpu.matmul %98, %97, %cst_27 {dimension_numbers = #tpu.dot_dimension_numbers<[1], [0], [0], [1], [0, 0, 1, 1], [], []>} : vector<2x72xbf16>, vector<72x512xbf16>, vector<2x512xf32> -> vector<2x512xf32>
    %c0_28 = arith.constant 0 : index
    %c0_29 = arith.constant 0 : index
    %100 = vector.load %arg8[%c0_28, %c0_29] : memref<2x1xf32, #tpu.memory_space<vmem>>, vector<2x1xf32>
    %101 = vector.broadcast %100 : vector<2x1xf32> to vector<2x512xf32>
    %102 = arith.addf %99, %101 : vector<2x512xf32>
    %103 = vector.extract_strided_slice %102 {offsets = [0, 0], sizes = [1, 512], strides = [1, 1]} : vector<2x512xf32> to vector<1x512xf32>
    %104 = vector.extract_strided_slice %102 {offsets = [1, 0], sizes = [1, 512], strides = [1, 1]} : vector<2x512xf32> to vector<1x512xf32>
    %105 = vector.broadcast %103 : vector<1x512xf32> to vector<4x512xf32>
    %106 = arith.mulf %105, %2 : vector<4x512xf32>
    %107 = vector.broadcast %104 : vector<1x512xf32> to vector<4x512xf32>
    %108 = arith.mulf %107, %3 : vector<4x512xf32>
    %109 = arith.subf %106, %108 : vector<4x512xf32>
    %c0_30 = arith.constant 0 : index
    %c0_31 = arith.constant 0 : index
    %110 = vector.load %arg9[%c0_30, %c0_31] : memref<4x512xf32, #tpu.memory_space<vmem>>, vector<4x512xf32>
    tpu.vector_store %arg9[%c0_30, %c0_31], %109 {strides = array<i32>} : memref<4x512xf32, #tpu.memory_space<vmem>>, vector<4x512xf32>,
    %111 = vector.broadcast %103 : vector<1x512xf32> to vector<4x512xf32>
    %112 = arith.mulf %111, %3 : vector<4x512xf32>
    %113 = vector.broadcast %104 : vector<1x512xf32> to vector<4x512xf32>
    %114 = arith.mulf %113, %2 : vector<4x512xf32>
    %115 = arith.addf %112, %114 : vector<4x512xf32>
    %c0_32 = arith.constant 0 : index
    %c0_33 = arith.constant 0 : index
    %116 = vector.load %arg10[%c0_32, %c0_33] : memref<4x512xf32, #tpu.memory_space<vmem>>, vector<4x512xf32>
    tpu.vector_store %arg10[%c0_32, %c0_33], %115 {strides = array<i32>} : memref<4x512xf32, #tpu.memory_space<vmem>>, vector<4x512xf32>,
    return
  }
}

module attributes {stable_mosaic.version = 11 : i64} {
  func.func @dc_kernel(%arg0: memref<2x4x512xf32, #tpu.memory_space<vmem>>, %arg1: memref<2x4x512xf32, #tpu.memory_space<vmem>>, %arg2: memref<2x4x512xf32, #tpu.memory_space<vmem>>, %arg3: memref<1x1x512xf32, #tpu.memory_space<vmem>>, %arg4: memref<2x4x512xf32, #tpu.memory_space<vmem>>) attributes {dimension_semantics = [], scalar_prefetch = 0 : i64, scratch_operands = 0 : i64, tpu.core_type = #tpu.core_type<tc>} {
    %c0 = arith.constant 0 : index
    %c0_0 = arith.constant 0 : index
    %c0_1 = arith.constant 0 : index
    %0 = vector.load %arg0[%c0, %c0_0, %c0_1] : memref<2x4x512xf32, #tpu.memory_space<vmem>>, vector<2x4x512xf32>
    %c0_2 = arith.constant 0 : index
    %c0_3 = arith.constant 0 : index
    %c0_4 = arith.constant 0 : index
    %1 = vector.load %arg3[%c0_2, %c0_3, %c0_4] : memref<1x1x512xf32, #tpu.memory_space<vmem>>, vector<1x1x512xf32>
    %c0_5 = arith.constant 0 : index
    %c0_6 = arith.constant 0 : index
    %c0_7 = arith.constant 0 : index
    %2 = vector.load %arg1[%c0_5, %c0_6, %c0_7] : memref<2x4x512xf32, #tpu.memory_space<vmem>>, vector<2x4x512xf32>
    %3 = arith.subf %0, %2 : vector<2x4x512xf32>
    %4 = vector.broadcast %1 : vector<1x1x512xf32> to vector<2x4x512xf32>
    %5 = arith.mulf %3, %4 : vector<2x4x512xf32>
    %6 = arith.subf %0, %5 : vector<2x4x512xf32>
    %c0_8 = arith.constant 0 : index
    %c0_9 = arith.constant 0 : index
    %c0_10 = arith.constant 0 : index
    %7 = vector.load %arg2[%c0_8, %c0_9, %c0_10] : memref<2x4x512xf32, #tpu.memory_space<vmem>>, vector<2x4x512xf32>
    %8 = arith.subf %6, %7 : vector<2x4x512xf32>
    %c0_11 = arith.constant 0 : index
    %c0_12 = arith.constant 0 : index
    %c0_13 = arith.constant 0 : index
    %9 = vector.load %arg4[%c0_11, %c0_12, %c0_13] : memref<2x4x512xf32, #tpu.memory_space<vmem>>, vector<2x4x512xf32>
    tpu.vector_store %arg4[%c0_11, %c0_12, %c0_13], %8 {strides = array<i32>} : memref<2x4x512xf32, #tpu.memory_space<vmem>>, vector<2x4x512xf32>,
    return
  }
}

</mosaic_0001>

<bundles_post_ra>
// kernel: cascadenet_block_forward.2
= control target key start
LH: loop header
LB: loop body
LE: loop exit
PB: predicated region body
PF: predicated region fallthrough
CT: control target
= control target key end

     0   :  { %vm70_vm0 = vcmask 1043456   ;;  %vm146_vm1 = vcmask 1040384   ;;  %vm151_vm2 = vcmask 1041408   ;;  %s798_s29 = smov 1   ;;  %s799_s30 = smov 15   ;;  %vm361_vm11 = vcmask 588800   ;;  %s1528_s0 = inlined_call_operand.vmem [shape: f32[4,512], index: 0, kind: input, shape index: {}]   ;;  %s1529_s1 = inlined_call_operand.vmem [shape: f32[4,512], index: 1, kind: input, shape index: {}]   ;;  %s1530_s2 = inlined_call_operand.vmem [shape: f32[4,512], index: 2, kind: input, shape index: {}]   ;;  %s1531_s3 = inlined_call_operand.vmem [shape: f32[4,512], index: 3, kind: input, shape index: {}]   ;;  %s1532_s4 = inlined_call_operand.vmem [shape: f32[9,512], index: 4, kind: input, shape index: {}]   ;;  %s1533_s6 = inlined_call_operand.vmem [shape: f32[8,1], index: 6, kind: input, shape index: {}]   ;;  %s1534_s5 = inlined_call_operand.vmem [shape: bf16[8,72], index: 5, kind: input, shape index: {}]   ;;  %s1535_s8 = inlined_call_operand.vmem [shape: f32[2,1], index: 8, kind: input, shape index: {}]   ;;  %s1536_s7 = inlined_call_operand.vmem [shape: bf16[2,72], index: 7, kind: input, shape index: {}]   ;;  %s1537_s9 = inlined_call_operand.vmem [shape: f32[4,512], index: 9, kind: output, shape index: {0}]   ;;  %s1538_s10 = inlined_call_operand.vmem [shape: f32[4,512], index: 10, kind: output, shape index: {1}]  }
   0x1   :  { %v36_v0 = vld [vmem:[%s1528_s0 + $0x8] sm:$0xff]  ;;  %v35_v5 = vld [vmem:[%s1528_s0] sm:$0xff]  ;;  %s794_s0 = smov 113   ;;  %s800_s11 = smov 17  }
   0x2   :  { %v38_v1 = vld [vmem:[%s1529_s1 + $0x8] sm:$0xff]  ;;  %v37_v6 = vld [vmem:[%s1529_s1] sm:$0xff]  ;;  %s795_s1 = smov 111   ;;  %s801_s12 = smov 16  }
   0x3   :  { %v867_v2 = vld [vmem:[%s1530_s2 + $0x8] sm:$0xff]  ;;  %v885_v8 = vld [vmem:[%s1530_s2] sm:$0xff]  ;;  %s796_s2 = smov 112  }
   0x4   :  { %v872_v3 = vld [vmem:[%s1531_s3 + $0x8] sm:$0xff]  ;;  %v52_v4 = vmul.f32 %v867_v2, %v36_v0  ;;  %v890_v9 = vld [vmem:[%s1531_s3] sm:$0xff]  ;;  %v51_v10 = vmul.f32 %v885_v8, %v35_v5  ;;  %v100_v14 = vmul.f32 %v867_v2, %v38_v1  ;;  %v99_v16 = vmul.f32 %v885_v8, %v37_v6  ;;  %s797_s3 = smov 127  }
   0x5   :  { %v54_v7 = vmul.f32 %v872_v3, %v38_v1  ;;  %v53_v11 = vmul.f32 %v890_v9, %v37_v6  ;;  %v102_v15 = vmul.f32 %v872_v3, %v36_v0  ;;  %v101_v17 = vmul.f32 %v890_v9, %v35_v5 }
   0x7   :  { %v56_v12 = vadd.f32 %v54_v7, %v52_v4  ;;  %v55_v13 = vadd.f32 %v53_v11, %v51_v10  ;;  %v104_v18 = vsub.f32 %v100_v14, %v102_v15  ;;  %v103_v21 = vsub.f32 %v99_v16, %v101_v17 }
   0x9   :  { %61 = vst [vmem:[#allocation1 + $0x10] ss:$2 sm:$0xff] %v56_v12 }
   0xa   :  { %59 = vst [vmem:[#allocation1] ss:$2 sm:$0xff] %v55_v13 }
  0x10   :  { %v64_v19 = vld.sshfl [vmem:[#allocation1 + $0x10] sm:$0xff pattern:$0x75316420]  ;;  %v65_v20 = vld.sshfl [vmem:[#allocation1 + $0x18] sm:$0xff pattern:$0x75316420] }
  0x11   :  { %v92_v22 = vsel %vm70_vm0, %v65_v20, 0.0  ;;  %109 = vst [vmem:[#allocation1 + $0x10] ss:$2 sm:$0xff] %v104_v18  ;;  %v85_v23 = vsel %vm70_vm0, %v64_v19, 0.0 }
  0x12   :  { %v93_v24 = vrot.slane %v92_v22, 4  ;;  %v86_v25 = vrot.slane %v85_v23, 4  ;;  %v62_v26 = vld.sshfl [vmem:[#allocation1] sm:$0xff pattern:$0x75316420] }
  0x13   :  { %v63_v27 = vld.sshfl [vmem:[#allocation1 + $0x8] sm:$0xff pattern:$0x75316420]  ;;  %v71_v28 = vsel %vm70_vm0, %v62_v26, 0.0 }
  0x14   :  { %v94_v29 = vadd.f32 %v93_v24, %v92_v22  ;;  %v87_v30 = vadd.f32 %v86_v25, %v85_v23  ;;  %v72_v31 = vrot.slane %v71_v28, 4  ;;  %107 = vst [vmem:[#allocation1] ss:$2 sm:$0xff] %v103_v21  ;;  %v78_v32 = vsel %vm70_vm0, %v63_v27, 0.0 }
  0x15   :  { %v79_v36 = vrot.slane %v78_v32, 4 }
  0x16   :  { %v95_v33 = vrot.slane %v94_v29, 2  ;;  %v88_v34 = vrot.slane %v87_v30, 2  ;;  %v73_v35 = vadd.f32 %v72_v31, %v71_v28 }
  0x17   :  { %v80_v51 = vadd.f32 %v79_v36, %v78_v32  ;;  %v164_v36 = vlaneseq }
  0x18   :  { %v96_v37 = vadd.f32 %v95_v33, %v94_v29  ;;  %v113_v38 = vld.sshfl [vmem:[#allocation1 + $0x18] sm:$0xff pattern:$0x75316420]  ;;  %v112_v39 = vld.sshfl [vmem:[#allocation1 + $0x10] sm:$0xff pattern:$0x75316420]  ;;  %v89_v41 = vadd.f32 %v88_v34, %v87_v30 }
  0x19   :  { %v139_v40 = vsel %vm70_vm0, %v113_v38, 0.0  ;;  %v132_v42 = vsel %vm70_vm0, %v112_v39, 0.0  ;;  %667 = vst [vmem:[#allocation1 + $0x10] ss:$2 sm:$0xff] %v867_v2  ;;  %v74_v43 = vrot.slane %v73_v35, 2  ;;  %v81_v5 = vrot.slane %v80_v51, 2 }
  0x1a   :  { %v140_v44 = vrot.slane %v139_v40, 4  ;;  %v133_v45 = vrot.slane %v132_v42, 4  ;;  %v97_v48 = vrot.slane %v96_v37, 1  ;;  %v90_v52 = vrot.slane %v89_v41, 1 }
  0x1b   :  { %v110_v46 = vld.sshfl [vmem:[#allocation1] sm:$0xff pattern:$0x75316420]  ;;  %v111_v47 = vld.sshfl [vmem:[#allocation1 + $0x8] sm:$0xff pattern:$0x75316420]  ;;  %v75_v53 = vadd.f32 %v74_v43, %v73_v35  ;;  %v82_v16 = vadd.f32 %v81_v5, %v80_v51 }
  0x1c   :  { %v141_v49 = vadd.f32 %v140_v44, %v139_v40  ;;  %v134_v50 = vadd.f32 %v133_v45, %v132_v42  ;;  %665 = vst [vmem:[#allocation1] ss:$2 sm:$0xff] %v885_v8  ;;  %v118_v54 = vsel %vm70_vm0, %v110_v46, 0.0  ;;  %v125_v55 = vsel %vm70_vm0, %v111_v47, 0.0  ;;  %v1007_v42 = vld [vmem:[%s1532_s4 + $0x38] ss:$0 sm:$0xff] }
  0x1d   :  { %v119_v58 = vrot.slane %v118_v54, 4  ;;  %v126_v59 = vrot.slane %v125_v55, 4  ;;  %v98_v0 = vadd.f32 %v97_v48, %v96_v37  ;;  %v91_v1 = vadd.f32 %v90_v52, %v89_v41  ;;  %v1002_v41 = vld [vmem:[%s1532_s4 + $0x30] ss:$0 sm:$0xff]  ;;  %v1016_v46 = vld [vmem:[%s1532_s4 + $0x18] sm:$0xff] }
  0x1e   :  { %v142_v56 = vrot.slane %v141_v49, 2  ;;  %v135_v57 = vrot.slane %v134_v50, 2  ;;  %v76_v4 = vrot.slane %v75_v53, 1  ;;  %v83_v25 = vrot.slane %v82_v16, 1 }
  0x1f   :  { %v120_v62 = vadd.f32 %v119_v58, %v118_v54  ;;  %v127_v63 = vadd.f32 %v126_v59, %v125_v55  ;;  %v992_v38 = vand.u32 127, %v164_v36  ;;  %v287_v54 = vperm.slane %v1016_v46, 6 }
  0x20   :  { %v143_v60 = vadd.f32 %v142_v56, %v141_v49  ;;  %v136_v61 = vadd.f32 %v135_v57, %v134_v50  ;;  %v77_v15 = vadd.f32 %v76_v4, %v75_v53  ;;  %v84_v28 = vadd.f32 %v83_v25, %v82_v16  ;;  %v1023_v49 = vld [vmem:[%s1532_s4 + $0x20] ss:$0 sm:$0xff]  ;;  %v1028_v50 = vld [vmem:[%s1532_s4 + $0x28] ss:$0 sm:$0xff] }
  0x21   :  { %v121_v10 = vrot.slane %v120_v62, 2  ;;  %v128_v11 = vrot.slane %v127_v63, 2  ;;  %vm321_vm3 = vcmp.lt.s32.totalorder %v992_v38, 111  ;;  %vm279_vm4 = vcmp.lt.s32.totalorder %v992_v38, 113  ;;  %v1086_v25 = vld [vmem:[%s1532_s4 + $0x8] sm:$0xff] }
  0x22   :  { %v144_v6 = vrot.slane %v143_v60, 1  ;;  %v137_v7 = vrot.slane %v136_v61, 1  ;;  %v308_v57 = vperm.slane %v1016_v46, 7  ;;  %vm300_vm5 = vcmp.lt.s32.totalorder %v992_v38, 112 }
  0x23   :  { %v122_v14 = vadd.f32 %v121_v10, %v120_v62  ;;  %v129_v20 = vadd.f32 %v128_v11, %v127_v63  ;;  %v245_v5 = vperm.slane %v1016_v46, 4  ;;  %vm258_vm6 = vcmp.lt.s32.totalorder %v992_v38, 127  ;;  %v1054_v10 = vld [vmem:[%s1532_s4 + $0x10] sm:$0xff] }
  0x24   :  { %v145_v12 = vadd.f32 %v144_v6, %v143_v60  ;;  %v138_v13 = vadd.f32 %v137_v7, %v136_v61  ;;  %v266_v7 = vperm.slane %v1016_v46, 5  ;;  %v306_v36 = vperm.slane %v1086_v25, 7 }
  0x25   :  { %v123_v19 = vrot.slane %v122_v14, 1  ;;  %v130_v26 = vrot.slane %v129_v20, 1  ;;  %vm229_vm7 = vcmp.lt.s32.totalorder %v992_v38, 1  ;;  %vm208_vm8 = vcmp.lt.s32.totalorder %v992_v38, 15 }
  0x26   :  { %v150_v17 = vsel %vm146_vm1, %v98_v0, %v145_v12  ;;  %v149_v18 = vsel %vm146_vm1, %v91_v1, %v138_v13  ;;  %vm166_vm9 = vcmp.lt.s32.totalorder %v992_v38, 17  ;;  %vm187_vm10 = vcmp.lt.s32.totalorder %v992_v38, 16  ;;  %v670_v38 = vld.sshfl [vmem:[#allocation1 + $0x10] sm:$0xff pattern:$0x75316420] }
  0x27   :  { %v911_v21 = vsel %vm151_vm2, %v150_v17, 0.0  ;;  %v914_v22 = vsel %vm151_vm2, %v149_v18, 0.0  ;;  %v124_v23 = vadd.f32 %v123_v19, %v122_v14  ;;  %v131_v29 = vadd.f32 %v130_v26, %v129_v20 }
  0x28   :  { %277 = vrot.lane.b32.xlu2 %v911_v21, %s794_s0  ;;  %317 = vrot.lane.b32.xlu1 %v914_v22, %s795_s1  ;;  %v249_v17 = vmul.f32 %v245_v5, %v911_v21  ;;  %v286_v18 = vperm.slane %v1054_v10, 6 }
  0x29   :  { %v147_v24 = vsel %vm146_vm1, %v77_v15, %v124_v23  ;;  %v148_v30 = vsel %vm146_vm1, %v84_v28, %v131_v29  ;;  %v1078_v23 = vld [vmem:[%s1532_s4] sm:$0xff] }
  0x2a   :  { %v922_v27 = vsel %vm151_vm2, %v147_v24, 0.0  ;;  %v934_v31 = vsel %vm151_vm2, %v148_v30, 0.0  ;;  %v307_v24 = vperm.slane %v1054_v10, 7 }
  0x2b   :  { %313 = vrot.lane.b32.xlu0 %v922_v27, %s795_s1 }
  0x30   :  { %292 = vrot.lane.b32.xlu2 %v922_v27, %s796_s2  ;;  %271 = vrot.lane.b32.xlu1 %v922_v27, %s794_s0 }
  0x33   :  { %319 = vrot.lane.b32.xlu0 %v911_v21, %s795_s1 }
  0x38   :  { %275 = vrot.lane.b32.xlu2 %v914_v22, %s794_s0  ;;  %315 = vrot.lane.b32.xlu1 %v934_v31, %s795_s1 }
  0x3b   :  { %298 = vrot.lane.b32.xlu0 %v911_v21, %s796_s2 }
  0x40   :  { %256 = vrot.lane.b32.xlu2 %v911_v21, %s797_s3  ;;  %250 = vrot.lane.b32.xlu1 %v922_v27, %s797_s3 }
  0x43   :  { %296 = vrot.lane.b32.xlu0 %v914_v22, %s796_s2 }
  0x48   :  { %294 = vrot.lane.b32.xlu2 %v934_v31, %s796_s2  ;;  %273 = vrot.lane.b32.xlu1 %v934_v31, %s794_s0 }
  0x4b   :  { %254 = vrot.lane.b32.xlu0 %v914_v22, %s797_s3 }
  0x50   :  { %225 = vrot.lane.b32.xlu2 %v914_v22, %s798_s29  ;;  %206 = vrot.lane.b32.xlu1 %v911_v21, %s799_s30 }
  0x53   :  { %204 = vrot.lane.b32.xlu0 %v914_v22, %s799_s30 }
  0x58   :  { %223 = vrot.lane.b32.xlu2 %v934_v31, %s798_s29  ;;  %202 = vrot.lane.b32.xlu1 %v934_v31, %s799_s30 }
  0x5b   :  { %227 = vrot.lane.b32.xlu0 %v911_v21, %s798_s29 }
  0x60   :  { %162 = vrot.lane.b32.xlu2 %v911_v21, %s800_s11  ;;  %160 = vrot.lane.b32.xlu1 %v914_v22, %s800_s11 }
  0x63   :  { %252 = vrot.lane.b32.xlu0 %v934_v31, %s797_s3 }
  0x68   :  { %158 = vrot.lane.b32.xlu2 %v934_v31, %s800_s11  ;;  %185 = vrot.lane.b32.xlu1 %v911_v21, %s801_s12 }
  0x6b   :  { %183 = vrot.lane.b32.xlu0 %v914_v22, %s801_s12 }
  0x70   :  { %221 = vrot.lane.b32.xlu2 %v922_v27, %s798_s29  ;;  %200 = vrot.lane.b32.xlu1 %v922_v27, %s799_s30 }
  0x73   :  { %181 = vrot.lane.b32.xlu0 %v934_v31, %s801_s12 }
  0x78   :  { %179 = vrot.lane.b32.xlu1 %v922_v27, %s801_s12 }
  0x7b   :  { %156 = vrot.lane.b32.xlu0 %v922_v27, %s800_s11 }
  0x82   :  { %v278_v32 = vpop.permute.xlu2 %277 }
  0x8a   :  { %v988_v33 = vpop.permute.xlu2 %292 }
  0x92   :  { %v990_v34 = vpop.permute.xlu2 %275 }
  0x93   :  { %v280_v20 = vsel %vm279_vm4, %v990_v34, %v278_v32 }
  0x94   :  { %v290_v30 = vmul.f32 %v286_v18, %v280_v20 }
  0x9a   :  { %v318_v35 = vpop.permute.xlu1 %317  ;;  %v994_v39 = vpop.permute.xlu2 %256 }
  0x9d   :  { %v314_v37 = vpop.permute.xlu0 %313 }
  0xa2   :  { %v996_v40 = vpop.permute.xlu1 %271  ;;  %v295_v58 = vpop.permute.xlu2 %294 }
  0xa3   :  { %v283_v63 = vsel %vm279_vm4, %v278_v32, %v996_v40  ;;  %v305_v32 = vperm.slane %v1078_v23, 7 }
  0xa4   :  { %v291_v11 = vmul.f32 %v287_v54, %v283_v63 }
  0xa5   :  { %v320_v43 = vpop.permute.xlu0 %319 }
  0xa6   :  { %v322_v44 = vsel %vm321_vm3, %v318_v35, %v320_v43  ;;  %v325_v45 = vsel %vm321_vm3, %v320_v43, %v314_v37  ;;  %v284_v43 = vperm.slane %v1078_v23, 6 }
  0xa7   :  { %v332_v47 = vmul.f32 %v1002_v41, %v322_v44  ;;  %v333_v48 = vmul.f32 %v1007_v42, %v325_v45  ;;  %v285_v44 = vperm.slane %v1086_v25, 6  ;;  %v303_v45 = vsel %vm300_vm5, %v988_v33, %v295_v58 }
  0xa9   :  { %v352_v51 = vpack.c.bf16 %v332_v47, %v332_v47  ;;  %v353_v52 = vpack.c.bf16 %v333_v48, %v333_v48 }
  0xaa   :  { %v316_v53 = vpop.permute.xlu1 %315  ;;  %v226_v26 = vpop.permute.xlu2 %225 }
  0xab   :  { %v323_v55 = vsel %vm321_vm3, %v316_v53, %v318_v35  ;;  %v324_v56 = vsel %vm321_vm3, %v314_v37, %v316_v53  ;;  %v372_v59 = vsel %vm70_vm0, %v352_v51, 0  ;;  %v375_v60 = vsel %vm70_vm0, %v353_v52, 0 }
  0xac   :  { %v330_v61 = vmul.f32 %v1023_v49, %v324_v56  ;;  %v331_v62 = vmul.f32 %v1028_v50, %v323_v55  ;;  %406 = vmatpush.bf16.msra.mxu2 %v372_v59  ;;  %419 = vmatpush.bf16.msra.mxu3 %v375_v60  ;;  %v244_v52 = vperm.slane %v1054_v10, 4  ;;  %v265_v56 = vperm.slane %v1054_v10, 5 }
  0xad   :  { %v299_v0 = vpop.permute.xlu0 %298 }
  0xae   :  { %v350_v1 = vpack.c.bf16 %v330_v61, %v330_v61  ;;  %v351_v4 = vpack.c.bf16 %v331_v62, %v331_v62  ;;  %v304_v6 = vsel %vm300_vm5, %v299_v0, %v988_v33  ;;  %v309_v33 = vmul.f32 %v305_v32, %v303_v45 }
  0xaf   :  { %v312_v12 = vmul.f32 %v308_v57, %v304_v6 }
  0xb0   :  { %v366_v13 = vsel %vm70_vm0, %v350_v1, 0  ;;  %v369_v14 = vsel %vm70_vm0, %v351_v4, 0 }
  0xb1   :  { %380 = vmatpush.bf16.msra.mxu0 %v366_v13  ;;  %393 = vmatpush.bf16.msra.mxu1 %v369_v14  ;;  %v349_v15 = vpack.c.bf16 %v312_v12, %v291_v11  ;;  %v215_v12 = vperm.slane %v1054_v10, 2 }
  0xb2   :  { %v1062_v16 = vpop.permute.xlu1 %250 }
  0xb3   :  { %v262_v19 = vsel %vm258_vm6, %v994_v39, %v1062_v16  ;;  %420 = vmatpush.bf16.msra.mxu3 %v349_v15 }
  0xb4   :  { %v270_v21 = vmul.f32 %v266_v7, %v262_v19  ;;  %v216_v19 = vperm.slane %v1016_v46, 2 }
  0xb5   :  { %v297_v28 = vpop.permute.xlu0 %296 }
  0xb6   :  { %v345_v29 = vpack.c.bf16 %v270_v21, %v249_v17  ;;  %v301_v35 = vsel %vm300_vm5, %v297_v28, %v299_v0  ;;  %v302_v47 = vsel %vm300_vm5, %v295_v58, %v297_v28  ;;  %v1125_v0 = vpop.permute.xlu2 %223  ;;  %v237_v21 = vperm.slane %v1016_v46, 3 }
  0xb7   :  { %v311_v37 = vmul.f32 %v307_v24, %v301_v35  ;;  %v310_v58 = vmul.f32 %v306_v36, %v302_v47 }
  0xb8   :  { %421 = vmatpush.bf16.msra.mxu3 %v345_v29 }
  0xb9   :  { %v348_v48 = vpack.c.bf16 %v311_v37, %v290_v30 }
  0xba   :  { %v274_v51 = vpop.permute.xlu1 %273 }
  0xbb   :  { %v281_v53 = vsel %vm279_vm4, %v274_v51, %v990_v34  ;;  %v282_v55 = vsel %vm279_vm4, %v996_v40, %v274_v51  ;;  %407 = vmatpush.bf16.msra.mxu2 %v348_v48  ;;  %v248_v40 = vmul.f32 %v244_v52, %v914_v22  ;;  %v236_v22 = vperm.slane %v1054_v10, 3 }
  0xbc   :  { %v288_v59 = vmul.f32 %v284_v43, %v282_v55  ;;  %v289_v60 = vmul.f32 %v285_v44, %v281_v53  ;;  %v242_v51 = vperm.slane %v1078_v23, 4  ;;  %v243_v53 = vperm.slane %v1086_v25, 4 }
  0xbd   :  { %v255_v34 = vpop.permute.xlu0 %254 }
  0xbe   :  { %v346_v61 = vpack.c.bf16 %v309_v33, %v288_v59  ;;  %v347_v62 = vpack.c.bf16 %v310_v58, %v289_v60  ;;  %v259_v63 = vsel %vm258_vm6, %v255_v34, %v994_v39  ;;  %v231_v39 = vsel %vm229_vm7, %v1125_v0, %v226_v26  ;;  %v1137_v13 = vpop.permute.xlu2 %162 }
  0xbf   :  { %v269_v1 = vmul.f32 %v265_v56, %v259_v63  ;;  %v240_v17 = vmul.f32 %v236_v22, %v231_v39  ;;  %v263_v33 = vperm.slane %v1078_v23, 5  ;;  %v246_v59 = vmul.f32 %v242_v51, %v922_v27 }
  0xc0   :  { %381 = vmatpush.bf16.msra.mxu0 %v346_v61  ;;  %394 = vmatpush.bf16.msra.mxu1 %v347_v62  ;;  %v247_v60 = vmul.f32 %v243_v53, %v934_v31 }
  0xc1   :  { %v344_v4 = vpack.c.bf16 %v269_v1, %v248_v40  ;;  %v355_v40 = vld [vmem:[%s1533_s6] sm:$0xff]  ;;  %v802_v1 = vmov 0  }
  0xc2   :  { %v1129_v6 = vpop.permute.xlu1 %206  ;;  %788 = vset.pattern.permute.xlu2 %v802_v1  ;;  %789 = vset.pattern.permute.xlu0 %v802_v1 }
  0xc3   :  { %408 = vmatpush.bf16.msra.mxu2 %v344_v4  ;;  %358 = vperm.xlu2 %788, %v355_v40  }
  0xc5   :  { %v205_v11 = vpop.permute.xlu0 %204 }
  0xc6   :  { %v209_v28 = vsel %vm208_vm8, %v205_v11, %v1129_v6  ;;  %v1159_v55 = vpop.permute.xlu2 %158 }
  0xc7   :  { %v220_v37 = vmul.f32 %v216_v19, %v209_v28  ;;  %v234_v28 = vperm.slane %v1078_v23, 3 }
  0xca   :  { %v203_v14 = vpop.permute.xlu1 %202 }
  0xcb   :  { %v210_v15 = vsel %vm208_vm8, %v203_v14, %v205_v11  ;;  %v1543_v11 = vperm.slane %v1016_v46, 1 }
  0xcc   :  { %v219_v20 = vmul.f32 %v215_v12, %v210_v15 }
  0xcd   :  { %v228_v29 = vpop.permute.xlu0 %227 }
  0xce   :  { %v340_v30 = vpack.c.bf16 %v240_v17, %v219_v20  ;;  %v230_v35 = vsel %vm229_vm7, %v226_v26, %v228_v29  ;;  %v264_v26 = vperm.slane %v1086_v25, 5  ;;  %v222_v15 = vpop.permute.xlu2 %221  ;;  %v235_v20 = vperm.slane %v1086_v25, 3 }
  0xcf   :  { %v241_v45 = vmul.f32 %v237_v21, %v230_v35  ;;  %v213_v35 = vperm.slane %v1078_v23, 2 }
  0xd0   :  { %409 = vmatpush.bf16.msra.mxu2 %v340_v30 }
  0xd1   :  { %v341_v47 = vpack.c.bf16 %v241_v45, %v220_v37  ;;  %v232_v37 = vsel %vm229_vm7, %v222_v15, %v1125_v0 }
  0xd2   :  { %v161_v48 = vpop.permute.xlu1 %160  ;;  %v239_v40 = vmul.f32 %v235_v20, %v232_v37 }
  0xd3   :  { %422 = vmatpush.bf16.msra.mxu3 %v341_v47  ;;  %v167_v39 = vsel %vm166_vm9, %v161_v48, %v1137_v13 }
  0xd5   :  { %v253_v58 = vpop.permute.xlu0 %252 }
  0xd6   :  { %v260_v61 = vsel %vm258_vm6, %v253_v58, %v255_v34  ;;  %v261_v62 = vsel %vm258_vm6, %v1062_v16, %v253_v58  ;;  %v1545_v16 = vperm.slane %v1016_v46, 0  ;;  %v214_v58 = vperm.slane %v1086_v25, 2 }
  0xd7   :  { %v267_v63 = vmul.f32 %v263_v33, %v261_v62  ;;  %v268_v27 = vmul.f32 %v264_v26, %v260_v61 }
  0xd8   :  { %v178_v45 = vmul.f32 %v1545_v16, %v167_v39 }
  0xd9   :  { %v342_v31 = vpack.c.bf16 %v267_v63, %v246_v59  ;;  %v343_v34 = vpack.c.bf16 %v268_v27, %v247_v60  ;;  %v233_v59 = vsel %vm229_vm7, %v228_v29, %v222_v15  ;;  %v173_v60 = vperm.slane %v1054_v10, 0 }
  0xda   :  { %v186_v4 = vpop.permute.xlu1 %185  ;;  %v1544_v27 = vperm.slane %v1054_v10, 1  ;;  %v238_v1 = vmul.f32 %v234_v28, %v233_v59  ;;  %v1542_v59 = vperm.slane %v1078_v23, 1 }
  0xdb   :  { %382 = vmatpush.bf16.msra.mxu0 %v342_v31  ;;  %395 = vmatpush.bf16.msra.mxu1 %v343_v34 }
  0xdd   :  { %v184_v17 = vpop.permute.xlu0 %183 }
  0xde   :  { %v188_v30 = vsel %vm187_vm10, %v184_v17, %v186_v4 }
  0xdf   :  { %v199_v47 = vmul.f32 %v1543_v11, %v188_v30 }
  0xe1   :  { %v337_v61 = vpack.c.bf16 %v199_v47, %v178_v45 }
  0xe2   :  { %v201_v62 = vpop.permute.xlu1 %200 }
  0xe3   :  { %v211_v0 = vsel %vm208_vm8, %v201_v62, %v203_v14  ;;  %v212_v63 = vsel %vm208_vm8, %v1129_v6, %v201_v62  ;;  %423 = vmatpush.bf16.msra.mxu3 %v337_v61  ;;  %v354_v14 = vld [vmem:[%s1534_s5] sm:$0xf]  ;;  %v168_v6 = vsel %vm166_vm9, %v1159_v55, %v161_v48  ;;  %v1541_v48 = vperm.slane %v1086_v25, 1 }
  0xe4   :  { %v217_v29 = vmul.f32 %v213_v35, %v212_v63  ;;  %v218_v31 = vmul.f32 %v214_v58, %v211_v0  ;;  %v177_v37 = vmul.f32 %v173_v60, %v168_v6  ;;  %v1539_v0 = vperm.slane %v1086_v25, 0 }
  0xe5   :  { %v182_v34 = vpop.permute.xlu0 %181 }
  0xe6   :  { %v338_v39 = vpack.c.bf16 %v238_v1, %v217_v29  ;;  %v339_v15 = vpack.c.bf16 %v239_v40, %v218_v31  ;;  %v189_v30 = vsel %vm187_vm10, %v182_v34, %v184_v17  ;;  %774 = vmatmul.msk.bf16.vlgmr.msra.gmra.mxu3 %vm361_vm11, %v354_v14  ;;  %v1540_v40 = vperm.slane %v1078_v23, 0 }
  0xe7   :  { %v198_v45 = vmul.f32 %v1544_v27, %v189_v30 }
  0xe8   :  { %383 = vmatpush.bf16.msra.mxu0 %v338_v39  ;;  %396 = vmatpush.bf16.msra.mxu1 %v339_v15 }
  0xe9   :  { %v336_v47 = vpack.c.bf16 %v198_v45, %v177_v37 }
  0xea   :  { %v180_v61 = vpop.permute.xlu1 %179 }
  0xeb   :  { %v190_v62 = vsel %vm187_vm10, %v180_v61, %v182_v34  ;;  %v191_v17 = vsel %vm187_vm10, %v186_v4, %v180_v61  ;;  %410 = vmatpush.bf16.msra.mxu2 %v336_v47 }
  0xec   :  { %v196_v63 = vmul.f32 %v1542_v59, %v191_v17  ;;  %v197_v1 = vmul.f32 %v1541_v48, %v190_v62 }
  0xed   :  { %v157_v29 = vpop.permute.xlu0 %156 }
  0xee   :  { %v169_v31 = vsel %vm166_vm9, %v157_v29, %v1159_v55  ;;  %v170_v4 = vsel %vm166_vm9, %v1137_v13, %v157_v29  ;;  %773 = vmatmul.msk.bf16.vlgmr.msra.gmra.mxu2 %vm361_vm11, %v354_v14 }
  0xef   :  { %v175_v6 = vmul.f32 %v1540_v40, %v170_v4  ;;  %v176_v34 = vmul.f32 %v1539_v0, %v169_v31 }
  0xf1   :  { %v334_v39 = vpack.c.bf16 %v196_v63, %v175_v6  ;;  %v335_v15 = vpack.c.bf16 %v197_v1, %v176_v34 }
  0xf3   :  { %384 = vmatpush.bf16.msra.mxu0 %v334_v39  ;;  %397 = vmatpush.bf16.msra.mxu1 %v335_v15  ;;  %v586_v39 = vld [vmem:[%s1535_s8] sm:$0x3] }
  0xf6   :  { %771 = vmatmul.msk.bf16.vlgmr.msra.gmra.mxu0 %vm361_vm11, %v354_v14  ;;  %772 = vmatmul.msk.bf16.vlgmr.msra.gmra.mxu1 %vm361_vm11, %v354_v14 }
 0x11d   :  { %v359_v30 = vpop.permute.xlu2 %358 }
 0x169   :  { %v425_v55 = vpop.f32.mrf.mxu3 }
 0x16a   :  { %v426_v4 = vadd.f32 %v425_v55, %v359_v30 }
 0x16c   :  { %v1286_v34 = vmax.f32 %v426_v4, 0.0 }
 0x171   :  { %v412_v37 = vpop.f32.mrf.mxu2  ;;  %v427_v13 = vpop.f32.mrf.mxu3 }
 0x172   :  { %v413_v31 = vadd.f32 %v412_v37, %v359_v30 }
 0x173   :  { %v386_v45 = vpop.f32.mrf.mxu0  ;;  %v399_v47 = vpop.f32.mrf.mxu1 }
 0x174   :  { %v387_v61 = vadd.f32 %v386_v45, %v359_v30  ;;  %v400_v62 = vadd.f32 %v399_v47, %v359_v30  ;;  %v1284_v6 = vmax.f32 %v413_v31, 0.0 }
 0x176   :  { %v1256_v17 = vmax.f32 %v387_v61, 0.0  ;;  %v1258_v29 = vmax.f32 %v400_v62, 0.0 }
 0x178   :  { %551 = vrot.lane.b32.xlu1 %v1258_v29, %s795_s1  ;;  %533 = vrot.lane.b32.xlu2 %v1256_v17, %s796_s2 }
 0x179   :  { %549 = vrot.lane.b32.xlu0 %v1256_v17, %s795_s1  ;;  %v414_v14 = vpop.f32.mrf.mxu2 }
 0x17b   :  { %v388_v63 = vpop.f32.mrf.mxu0  ;;  %v401_v1 = vpop.f32.mrf.mxu1 }
 0x180   :  { %501 = vrot.lane.b32.xlu1 %v1256_v17, %s797_s3  ;;  %535 = vrot.lane.b32.xlu2 %v1258_v29, %s796_s2 }
 0x181   :  { %517 = vrot.lane.b32.xlu0 %v1256_v17, %s794_s0 }
 0x188   :  { %519 = vrot.lane.b32.xlu1 %v1258_v29, %s794_s0  ;;  %483 = vrot.lane.b32.xlu2 %v1258_v29, %s798_s29 }
 0x189   :  { %503 = vrot.lane.b32.xlu0 %v1258_v29, %s797_s3 }
 0x190   :  { %467 = vrot.lane.b32.xlu1 %v1258_v29, %s799_s30  ;;  %435 = vrot.lane.b32.xlu2 %v1258_v29, %s800_s11 }
 0x191   :  { %451 = vrot.lane.b32.xlu0 %v1258_v29, %s801_s12 }
 0x198   :  { %465 = vrot.lane.b32.xlu1 %v1256_v17, %s799_s30  ;;  %553 = vrot.lane.b32.xlu2 %v1284_v6, %s795_s1 }
 0x199   :  { %539 = vrot.lane.b32.xlu0 %v1286_v34, %s796_s2 }
 0x1a0   :  { %555 = vrot.lane.b32.xlu1 %v1286_v34, %s795_s1  ;;  %521 = vrot.lane.b32.xlu2 %v1284_v6, %s794_s0 }
 0x1a1   :  { %537 = vrot.lane.b32.xlu0 %v1284_v6, %s796_s2 }
 0x1a8   :  { %523 = vrot.lane.b32.xlu1 %v1286_v34, %s794_s0  ;;  %507 = vrot.lane.b32.xlu2 %v1286_v34, %s797_s3 }
 0x1a9   :  { %505 = vrot.lane.b32.xlu0 %v1284_v6, %s797_s3 }
 0x1b0   :  { %471 = vrot.lane.b32.xlu1 %v1286_v34, %s799_s30  ;;  %485 = vrot.lane.b32.xlu2 %v1284_v6, %s798_s29 }
 0x1b1   :  { %469 = vrot.lane.b32.xlu0 %v1284_v6, %s799_s30 }
 0x1b8   :  { %437 = vrot.lane.b32.xlu1 %v1284_v6, %s800_s11  ;;  %439 = vrot.lane.b32.xlu2 %v1286_v34, %s800_s11 }
 0x1b9   :  { %487 = vrot.lane.b32.xlu0 %v1286_v34, %s798_s29 }
 0x1c0   :  { %455 = vrot.lane.b32.xlu1 %v1286_v34, %s801_s12  ;;  %481 = vrot.lane.b32.xlu2 %v1256_v17, %s798_s29 }
 0x1c1   :  { %453 = vrot.lane.b32.xlu0 %v1284_v6, %s801_s12 }
 0x1c8   :  { %449 = vrot.lane.b32.xlu1 %v1256_v17, %s801_s12  ;;  %589 = vperm.xlu2 %788, %v586_v39  }
 0x1c9   :  { %433 = vrot.lane.b32.xlu0 %v1256_v17, %s800_s11 }
 0x1d2   :  { %v534_v15 = vpop.permute.xlu2 %533 }
 0x1da   :  { %v536_v55 = vpop.permute.xlu2 %535 }
 0x1db   :  { %v543_v48 = vsel %vm300_vm5, %v534_v15, %v536_v55 }
 0x1e2   :  { %v1331_v30 = vpop.permute.xlu2 %483 }
 0x1ea   :  { %v552_v37 = vpop.permute.xlu1 %551  ;;  %v1333_v13 = vpop.permute.xlu2 %435 }
 0x1eb   :  { %v550_v45 = vpop.permute.xlu0 %549 }
 0x1ec   :  { %v559_v47 = vsel %vm321_vm3, %v550_v45, %v552_v37 }
 0x1ed   :  { %v561_v61 = vmul.f32 %v1023_v49, %v559_v47 }
 0x1ef   :  { %v581_v62 = vpack.c.bf16 %v561_v61, %v561_v61 }
 0x1f1   :  { %v596_v14 = vsel %vm70_vm0, %v581_v62, 0 }
 0x1f2   :  { %610 = vmatpush.bf16.msrb.mxu0 %v596_v14  ;;  %v502_v63 = vpop.permute.xlu1 %501  ;;  %v554_v1 = vpop.permute.xlu2 %553  ;;  %v545_v14 = vmul.f32 %v543_v48, %v305_v32 }
 0x1f3   :  { %v558_v31 = vsel %vm321_vm3, %v552_v37, %v554_v1  ;;  %v518_v4 = vpop.permute.xlu0 %517 }
 0x1f4   :  { %v562_v39 = vmul.f32 %v1028_v50, %v558_v31 }
 0x1f6   :  { %v582_v0 = vpack.c.bf16 %v562_v39, %v562_v39 }
 0x1f8   :  { %v599_v40 = vsel %vm70_vm0, %v582_v0, 0 }
 0x1f9   :  { %623 = vmatpush.bf16.msrb.mxu1 %v599_v40  ;;  %v497_v40 = vmul.f32 %v1256_v17, %v242_v51 }
 0x1fa   :  { %v520_v49 = vpop.permute.xlu1 %519  ;;  %v522_v47 = vpop.permute.xlu2 %521 }
 0x1fb   :  { %v527_v61 = vsel %vm279_vm4, %v518_v4, %v520_v49  ;;  %v504_v62 = vpop.permute.xlu0 %503 }
 0x1fc   :  { %v529_v37 = vmul.f32 %v527_v61, %v284_v43  ;;  %v511_v50 = vsel %vm258_vm6, %v502_v63, %v504_v62 }
 0x1fd   :  { %v513_v0 = vmul.f32 %v511_v50, %v263_v33  ;;  %v526_v33 = vsel %vm279_vm4, %v520_v49, %v522_v47 }
 0x1fe   :  { %v577_v31 = vpack.c.bf16 %v545_v14, %v529_v37  ;;  %v530_v49 = vmul.f32 %v526_v33, %v285_v44 }
 0x1ff   :  { %v573_v11 = vpack.c.bf16 %v513_v0, %v497_v40 }
 0x200   :  { %611 = vmatpush.bf16.msrb.mxu0 %v577_v31 }
 0x202   :  { %v1358_v39 = vpop.permute.xlu1 %467  ;;  %v508_v59 = vpop.permute.xlu2 %507 }
 0x203   :  { %v1360_v32 = vpop.permute.xlu0 %451  ;;  %v512_v44 = vsel %vm258_vm6, %v508_v59, %v502_v63 }
 0x204   :  { %612 = vmatpush.bf16.msrb.mxu0 %v573_v11 }
 0x20a   :  { %v1362_v43 = vpop.permute.xlu1 %465  ;;  %v1364_v48 = vpop.permute.xlu2 %485 }
 0x20b   :  { %v540_v61 = vpop.permute.xlu0 %539 }
 0x212   :  { %v556_v14 = vpop.permute.xlu1 %555  ;;  %v1368_v37 = vpop.permute.xlu2 %439 }
 0x213   :  { %v557_v51 = vsel %vm321_vm3, %v554_v1, %v556_v14  ;;  %v560_v17 = vsel %vm321_vm3, %v556_v14, %v550_v45  ;;  %v538_v50 = vpop.permute.xlu0 %537  ;;  %v544_v45 = vsel %vm300_vm5, %v540_v61, %v534_v15 }
 0x214   :  { %v563_v11 = vmul.f32 %v1002_v41, %v557_v51  ;;  %v564_v0 = vmul.f32 %v1007_v42, %v560_v17  ;;  %v542_v31 = vsel %vm300_vm5, %v536_v55, %v538_v50  ;;  %v541_v42 = vsel %vm300_vm5, %v538_v50, %v540_v61 }
 0x215   :  { %v546_v40 = vmul.f32 %v542_v31, %v306_v36  ;;  %v548_v33 = vmul.f32 %v544_v45, %v308_v57  ;;  %v547_v61 = vmul.f32 %v541_v42, %v307_v24  ;;  %v516_v57 = vmul.f32 %v512_v44, %v266_v7 }
 0x216   :  { %v583_v27 = vpack.c.bf16 %v563_v11, %v563_v11  ;;  %v584_v16 = vpack.c.bf16 %v564_v0, %v564_v0  ;;  %v475_v7 = vsel %vm208_vm8, %v1362_v43, %v1358_v39  ;;  %v490_v11 = vsel %vm229_vm7, %v1331_v30, %v1364_v48 }
 0x217   :  { %v578_v1 = vpack.c.bf16 %v546_v40, %v530_v49 }
 0x218   :  { %v602_v14 = vsel %vm70_vm0, %v583_v27, 0  ;;  %v605_v41 = vsel %vm70_vm0, %v584_v16, 0 }
 0x219   :  { %624 = vmatpush.bf16.msrb.mxu1 %v578_v1  ;;  %636 = vmatpush.bf16.msrb.mxu2 %v602_v14 }
 0x21a   :  { %649 = vmatpush.bf16.msrb.mxu3 %v605_v41  ;;  %v524_v36 = vpop.permute.xlu1 %523  ;;  %v482_v55 = vpop.permute.xlu2 %481 }
 0x21b   :  { %v525_v15 = vsel %vm279_vm4, %v522_v47, %v524_v36  ;;  %v528_v16 = vsel %vm279_vm4, %v524_v36, %v518_v4  ;;  %v506_v27 = vpop.permute.xlu0 %505  ;;  %v491_v4 = vsel %vm229_vm7, %v482_v55, %v1331_v30 }
 0x21c   :  { %v531_v51 = vmul.f32 %v525_v15, %v286_v18  ;;  %v532_v63 = vmul.f32 %v528_v16, %v287_v54  ;;  %v509_v17 = vsel %vm258_vm6, %v506_v27, %v508_v59  ;;  %v510_v47 = vsel %vm258_vm6, %v504_v62, %v506_v27 }
 0x21d   :  { %v498_v18 = vmul.f32 %v1258_v29, %v243_v53  ;;  %v514_v54 = vmul.f32 %v510_v47, %v264_v26  ;;  %v515_v24 = vmul.f32 %v509_v17, %v265_v56  ;;  %v500_v62 = vmul.f32 %v1286_v34, %v245_v5 }
 0x21e   :  { %v579_v59 = vpack.c.bf16 %v547_v61, %v531_v51  ;;  %v580_v50 = vpack.c.bf16 %v548_v33, %v532_v63  ;;  %v494_v53 = vmul.f32 %v491_v4, %v235_v20  ;;  %v499_v56 = vmul.f32 %v1284_v6, %v244_v52 }
 0x21f   :  { %v574_v29 = vpack.c.bf16 %v514_v54, %v498_v18  ;;  %v478_v26 = vmul.f32 %v475_v7, %v214_v58  ;;  %v576_v0 = vpack.c.bf16 %v516_v57, %v500_v62  ;;  %v495_v52 = vmul.f32 %v490_v11, %v236_v22  ;;  %v585_v57 = vld [vmem:[%s1536_s7] sm:$0x1] }
 0x220   :  { %637 = vmatpush.bf16.msrb.mxu2 %v579_v59  ;;  %650 = vmatpush.bf16.msrb.mxu3 %v580_v50  ;;  %v575_v34 = vpack.c.bf16 %v515_v24, %v499_v56  ;;  %v1546_v33 = vperm.slane %v1016_v46, 0  ;;  %v1547_v16 = vperm.slane %v1054_v10, 1  ;;  %v1548_v61 = vperm.slane %v1016_v46, 1 }
 0x221   :  { %625 = vmatpush.bf16.msrb.mxu1 %v574_v29  ;;  %v570_v49 = vpack.c.bf16 %v494_v53, %v478_v26  ;;  %v1549_v46 = vperm.slane %v1078_v23, 1  ;;  %v1550_v54 = vperm.slane %v1086_v25, 1  ;;  %v1552_v62 = vperm.slane %v1086_v25, 0 }
 0x222   :  { %v472_v5 = vpop.permute.xlu1 %471 }
 0x223   :  { %v470_v20 = vpop.permute.xlu0 %469  ;;  %v476_v30 = vsel %vm208_vm8, %v472_v5, %v1362_v43 }
 0x224   :  { %v474_v31 = vsel %vm208_vm8, %v1358_v39, %v470_v20  ;;  %638 = vmatpush.bf16.msrb.mxu2 %v575_v34  ;;  %651 = vmatpush.bf16.msrb.mxu3 %v576_v0  ;;  %v473_v40 = vsel %vm208_vm8, %v470_v20, %v472_v5 }
 0x225   :  { %v479_v58 = vmul.f32 %v474_v31, %v215_v12  ;;  %626 = vmatpush.bf16.msrb.mxu1 %v570_v49  ;;  %v477_v12 = vmul.f32 %v476_v30, %v213_v35  ;;  %v480_v14 = vmul.f32 %v473_v40, %v216_v19  ;;  %v590_v49 = vpop.permute.xlu2 %589 }
 0x227   :  { %v571_v6 = vpack.c.bf16 %v495_v52, %v479_v58 }
 0x229   :  { %639 = vmatpush.bf16.msrb.mxu2 %v571_v6 }
 0x22a   :  { %v438_v39 = vpop.permute.xlu1 %437 }
 0x22b   :  { %v488_v1 = vpop.permute.xlu0 %487  ;;  %v442_v35 = vsel %vm166_vm9, %v1333_v13, %v438_v39 }
 0x22c   :  { %v489_v45 = vsel %vm229_vm7, %v1364_v48, %v488_v1  ;;  %v492_v22 = vsel %vm229_vm7, %v488_v1, %v482_v55  ;;  %v441_v48 = vsel %vm166_vm9, %v438_v39, %v1368_v37  ;;  %v447_v55 = vmul.f32 %v442_v35, %v173_v60 }
 0x22d   :  { %v493_v43 = vmul.f32 %v492_v22, %v234_v28  ;;  %v496_v41 = vmul.f32 %v489_v45, %v237_v21  ;;  %v448_v15 = vmul.f32 %v441_v48, %v1546_v33 }
 0x22f   :  { %v569_v42 = vpack.c.bf16 %v493_v43, %v477_v12  ;;  %v572_v44 = vpack.c.bf16 %v496_v41, %v480_v14 }
 0x231   :  { %613 = vmatpush.bf16.msrb.mxu0 %v569_v42  ;;  %652 = vmatpush.bf16.msrb.mxu3 %v572_v44 }
 0x232   :  { %v456_v36 = vpop.permute.xlu1 %455 }
 0x233   :  { %v454_v19 = vpop.permute.xlu0 %453 }
 0x234   :  { %v457_v28 = vsel %vm187_vm10, %v454_v19, %v456_v36  ;;  %v458_v21 = vsel %vm187_vm10, %v1360_v32, %v454_v19 }
 0x235   :  { %v463_v27 = vmul.f32 %v458_v21, %v1547_v16  ;;  %v464_v51 = vmul.f32 %v457_v28, %v1548_v61 }
 0x237   :  { %v567_v63 = vpack.c.bf16 %v463_v27, %v447_v55  ;;  %v568_v17 = vpack.c.bf16 %v464_v51, %v448_v15 }
 0x239   :  { %640 = vmatpush.bf16.msrb.mxu2 %v567_v63  ;;  %653 = vmatpush.bf16.msrb.mxu3 %v568_v17 }
 0x23a   :  { %v450_v4 = vpop.permute.xlu1 %449 }
 0x23b   :  { %v459_v60 = vsel %vm187_vm10, %v450_v4, %v1360_v32  ;;  %v460_v10 = vsel %vm187_vm10, %v456_v36, %v450_v4  ;;  %v434_v47 = vpop.permute.xlu0 %433  ;;  %v1551_v32 = vperm.slane %v1078_v23, 0  ;;  %v669_v23 = vld.sshfl [vmem:[#allocation1 + $0x8] sm:$0xff pattern:$0x75316420] }
 0x23c   :  { %v461_v18 = vmul.f32 %v460_v10, %v1549_v46  ;;  %v462_v24 = vmul.f32 %v459_v60, %v1550_v54  ;;  %v443_v59 = vsel %vm166_vm9, %v434_v47, %v1333_v13  ;;  %v444_v50 = vsel %vm166_vm9, %v1368_v37, %v434_v47  ;;  %777 = vmatmul.msk.bf16.vlgmr.msrb.gmra.mxu2 %vm361_vm11, %v585_v57  ;;  %v671_v13 = vld.sshfl [vmem:[#allocation1 + $0x18] sm:$0xff pattern:$0x75316420]  ;;  %v668_v37 = vld.sshfl [vmem:[#allocation1] sm:$0xff pattern:$0x75316420] }
 0x23d   :  { %v445_v7 = vmul.f32 %v444_v50, %v1551_v32  ;;  %v446_v53 = vmul.f32 %v443_v59, %v1552_v62  ;;  %778 = vmatmul.msk.bf16.vlgmr.msrb.gmra.mxu3 %vm361_vm11, %v585_v57  ;;  %688 = vst [vmem:[#allocation1 + $0x10] ss:$2 sm:$0xff] %v872_v3 }
 0x23e   :  { %686 = vst [vmem:[#allocation1] ss:$2 sm:$0xff] %v890_v9 }
 0x23f   :  { %v565_v29 = vpack.c.bf16 %v461_v18, %v445_v7  ;;  %v566_v56 = vpack.c.bf16 %v462_v24, %v446_v53 }
 0x241   :  { %614 = vmatpush.bf16.msrb.mxu0 %v565_v29  ;;  %627 = vmatpush.bf16.msrb.mxu1 %v566_v56 }
 0x244   :  { %775 = vmatmul.msk.bf16.vlgmr.msrb.gmra.mxu0 %vm361_vm11, %v585_v57  ;;  %776 = vmatmul.msk.bf16.vlgmr.msrb.gmra.mxu1 %vm361_vm11, %v585_v57  ;;  %v691_v25 = vld.sshfl [vmem:[#allocation1 + $0x10] sm:$0xff pattern:$0x75316420]  ;;  %v692_v26 = vld.sshfl [vmem:[#allocation1 + $0x18] sm:$0xff pattern:$0x75316420] }
 0x245   :  { %719 = vst [vmem:[#allocation1 + $0x10] ss:$2 sm:$0xff] %v872_v3  ;;  %v689_v11 = vld.sshfl [vmem:[#allocation1] sm:$0xff pattern:$0x75316420] }
 0x246   :  { %v690_v5 = vld.sshfl [vmem:[#allocation1 + $0x8] sm:$0xff pattern:$0x75316420] }
 0x247   :  { %717 = vst [vmem:[#allocation1] ss:$2 sm:$0xff] %v890_v9 }
 0x24c   :  { %v722_v34 = vld.sshfl [vmem:[#allocation1 + $0x10] sm:$0xff pattern:$0x75316420]  ;;  %v723_v0 = vld.sshfl [vmem:[#allocation1 + $0x18] sm:$0xff pattern:$0x75316420] }
 0x24d   :  { %734 = vst [vmem:[#allocation1 + $0x10] ss:$2 sm:$0xff] %v867_v2 }
 0x24e   :  { %v720_v20 = vld.sshfl [vmem:[#allocation1] sm:$0xff pattern:$0x75316420]  ;;  %v721_v31 = vld.sshfl [vmem:[#allocation1 + $0x8] sm:$0xff pattern:$0x75316420] }
 0x24f   :  { %732 = vst [vmem:[#allocation1] ss:$2 sm:$0xff] %v885_v8 }
 0x254   :  { %v737_v30 = vld.sshfl [vmem:[#allocation1 + $0x10] sm:$0xff pattern:$0x75316420]  ;;  %v738_v22 = vld.sshfl [vmem:[#allocation1 + $0x18] sm:$0xff pattern:$0x75316420] }
 0x256   :  { %v735_v21 = vld.sshfl [vmem:[#allocation1] sm:$0xff pattern:$0x75316420]  ;;  %v736_v27 = vld.sshfl [vmem:[#allocation1 + $0x8] sm:$0xff pattern:$0x75316420] }
 0x2bf   :  { %v642_v52 = vpop.f32.mrf.mxu2 }
 0x2c0   :  { %v643_v58 = vadd.f32 %v642_v52, %v590_v49  ;;  %v655_v6 = vpop.f32.mrf.mxu3 }
 0x2c1   :  { %v656_v40 = vadd.f32 %v655_v6, %v590_v49  ;;  %v616_v39 = vpop.f32.mrf.mxu0  ;;  %v629_v3 = vpop.f32.mrf.mxu1 }
 0x2c2   :  { %v661_v1 = vperm.slane %v643_v58, 0  ;;  %v682_v45 = vperm.slane %v643_v58, 1  ;;  %v617_v9 = vadd.f32 %v616_v39, %v590_v49  ;;  %v630_v43 = vadd.f32 %v629_v3, %v590_v49 }
 0x2c3   :  { %v662_v12 = vperm.slane %v656_v40, 0  ;;  %v683_v14 = vperm.slane %v656_v40, 1 }
 0x2c4   :  { %v678_v2 = vmul.f32 %v670_v38, %v661_v1  ;;  %v699_v41 = vmul.f32 %v691_v25, %v682_v45  ;;  %v730_v42 = vmul.f32 %v722_v34, %v661_v1  ;;  %v745_v44 = vmul.f32 %v737_v30, %v682_v45 }
 0x2c5   :  { %v679_v8 = vmul.f32 %v671_v13, %v662_v12  ;;  %v700_v48 = vmul.f32 %v692_v26, %v683_v14  ;;  %v731_v35 = vmul.f32 %v723_v0, %v662_v12  ;;  %v746_v36 = vmul.f32 %v738_v22, %v683_v14 }
 0x2c6   :  { %v659_v19 = vperm.slane %v617_v9, 0  ;;  %v680_v28 = vperm.slane %v617_v9, 1  ;;  %v660_v15 = vperm.slane %v630_v43, 0  ;;  %v681_v16 = vperm.slane %v630_v43, 1 }
 0x2c7   :  { %v704_v55 = vsub.f32 %v679_v8, %v700_v48  ;;  %v750_v33 = vadd.f32 %v746_v36, %v731_v35  ;;  %v644_v61 = vpop.f32.mrf.mxu2  ;;  %v703_v51 = vsub.f32 %v678_v2, %v699_v41  ;;  %v749_v63 = vadd.f32 %v745_v44, %v730_v42 }
 0x2c8   :  { %v676_v17 = vmul.f32 %v668_v37, %v659_v19  ;;  %v697_v57 = vmul.f32 %v689_v11, %v680_v28  ;;  %v657_v4 = vpop.f32.mrf.mxu3  ;;  %v677_v47 = vmul.f32 %v669_v23, %v660_v15  ;;  %v698_v46 = vmul.f32 %v690_v5, %v681_v16 }
 0x2c9   :  { %v710_v60 = vrot.slane %v704_v55, 4  ;;  %v756_v10 = vrot.slane %v750_v33, 4  ;;  %v618_v18 = vpop.f32.mrf.mxu0  ;;  %v631_v54 = vpop.f32.mrf.mxu1  ;;  %v728_v24 = vmul.f32 %v720_v20, %v659_v19  ;;  %v743_v59 = vmul.f32 %v735_v21, %v680_v28 }
 0x2ca   :  { %v729_v50 = vmul.f32 %v721_v31, %v660_v15  ;;  %v744_v32 = vmul.f32 %v736_v27, %v681_v16  ;;  %v702_v53 = vsub.f32 %v677_v47, %v698_v46  ;;  %v701_v56 = vsub.f32 %v676_v17, %v697_v57 }
 0x2cb   :  { %v712_v7 = vsel %vm70_vm0, %v703_v51, %v710_v60  ;;  %v758_v62 = vsel %vm70_vm0, %v749_v63, %v756_v10  ;;  %v747_v13 = vadd.f32 %v743_v59, %v728_v24 }
 0x2cc   :  { %716 = vst [vmem:[%s1537_s9 + $0x8] sm:$0xff] %v712_v7  ;;  %v748_v29 = vadd.f32 %v744_v32, %v729_v50  ;;  %v709_v38 = vrot.slane %v702_v53, 4 }
 0x2cd   :  { %762 = vst [vmem:[%s1538_s10 + $0x8] sm:$0xff] %v758_v62 }
 0x2ce   :  { %v755_v37 = vrot.slane %v748_v29, 4  ;;  %v711_v23 = vsel %vm70_vm0, %v701_v56, %v709_v38 }
 0x2cf   :  { %715 = vst [vmem:[%s1537_s9] sm:$0xff] %v711_v23 }
 0x2d0   :  { %v757_v25 = vsel %vm70_vm0, %v747_v13, %v755_v37 }
 0x2d1   :  { %761 = vst [vmem:[%s1538_s10] sm:$0xff] %v757_v25 }

// kernel: cascadenet_block_forward.3
= control target key start
LH: loop header
LB: loop body
LE: loop exit
PB: predicated region body
PF: predicated region fallthrough
CT: control target
= control target key end

     0   :  { %vm37_vm0 = vcmask 1043456   ;;  %s142_s0 = inlined_call_operand.vmem [shape: f32[2,4,512], index: 0, kind: input, shape index: {}]   ;;  %s143_s1 = inlined_call_operand.vmem [shape: f32[2,4,512], index: 1, kind: input, shape index: {}]   ;;  %s144_s3 = inlined_call_operand.vmem [shape: f32[1,1,512], index: 3, kind: input, shape index: {}]   ;;  %s145_s2 = inlined_call_operand.vmem [shape: f32[2,4,512], index: 2, kind: input, shape index: {}]   ;;  %s146_s4 = inlined_call_operand.vmem [shape: f32[2,4,512], index: 4, kind: output, shape index: {}]  }
   0x1   :  { %v17_v0 = vld [vmem:[%s142_s0] sm:$0xff]  ;;  %v18_v5 = vld [vmem:[%s142_s0 + $0x8] sm:$0xff]  ;;  %v19_v10 = vld [vmem:[%s142_s0 + $0x10] sm:$0xff] }
   0x2   :  { %v21_v1 = vld [vmem:[%s144_s3] sm:$0xf]  ;;  %v23_v6 = vld [vmem:[%s143_s1 + $0x8] sm:$0xff]  ;;  %v24_v11 = vld [vmem:[%s143_s1 + $0x10] sm:$0xff] }
   0x3   :  { %v22_v2 = vld [vmem:[%s143_s1] sm:$0xff]  ;;  %v31_v3 = vperm.slane %v21_v1, 0  ;;  %v32_v4 = vperm.slane %v21_v1, 1  ;;  %v33_v8 = vperm.slane %v21_v1, 2  ;;  %v34_v9 = vperm.slane %v21_v1, 3  ;;  %v20_v15 = vld [vmem:[%s142_s0 + $0x18] sm:$0xff] }
   0x4   :  { %v26_v7 = vsub.f32 %v17_v0, %v22_v2  ;;  %v27_v13 = vsub.f32 %v18_v5, %v23_v6  ;;  %v28_v14 = vsub.f32 %v19_v10, %v24_v11  ;;  %v25_v16 = vld [vmem:[%s143_s1 + $0x18] sm:$0xff]  ;;  %v50_v23 = vld [vmem:[%s145_s2] sm:$0xff]  ;;  %v52_v25 = vld [vmem:[%s145_s2 + $0x10] sm:$0xff] }
   0x5   :  { %v35_v12 = vrot.slane %v32_v4, 4  ;;  %v36_v17 = vrot.slane %v34_v9, 4  ;;  %v29_v18 = vsub.f32 %v20_v15, %v25_v16  ;;  %v51_v28 = vld [vmem:[%s145_s2 + $0x8] sm:$0xff]  ;;  %v53_v30 = vld [vmem:[%s145_s2 + $0x18] sm:$0xff] }
   0x7   :  { %v38_v19 = vsel %vm37_vm0, %v31_v3, %v35_v12  ;;  %v39_v21 = vsel %vm37_vm0, %v33_v8, %v36_v17 }
   0x8   :  { %v42_v20 = vmul.f32 %v38_v19, %v26_v7  ;;  %v44_v22 = vmul.f32 %v38_v19, %v28_v14  ;;  %v43_v24 = vmul.f32 %v39_v21, %v27_v13  ;;  %v45_v26 = vmul.f32 %v39_v21, %v29_v18 }
   0xa   :  { %v46_v27 = vsub.f32 %v17_v0, %v42_v20  ;;  %v48_v29 = vsub.f32 %v19_v10, %v44_v22  ;;  %v47_v31 = vsub.f32 %v18_v5, %v43_v24  ;;  %v49_v32 = vsub.f32 %v20_v15, %v45_v26 }
   0xc   :  { %v54_v33 = vsub.f32 %v46_v27, %v50_v23  ;;  %v56_v34 = vsub.f32 %v48_v29, %v52_v25  ;;  %v55_v35 = vsub.f32 %v47_v31, %v51_v28  ;;  %v57_v36 = vsub.f32 %v49_v32, %v53_v30 }
   0xe   :  { %58 = vst [vmem:[%s146_s4] sm:$0xff] %v54_v33 }
   0xf   :  { %59 = vst [vmem:[%s146_s4 + $0x8] sm:$0xff] %v55_v35 }
  0x10   :  { %60 = vst [vmem:[%s146_s4 + $0x10] sm:$0xff] %v56_v34 }
  0x11   :  { %61 = vst [vmem:[%s146_s4 + $0x18] sm:$0xff] %v57_v36 }

</bundles_post_ra>
